<compile_context>
chip_gen: v7x
topology: tpu7x:2x2x1
jax: 0.10.0
libtpu: 0.0.40
codegen_flags: <defaults>
</compile_context>

<pallas_src>
import functools

import jax
import jax.numpy as jnp
from jax import lax
from jax.experimental import pallas as pl
from jax.experimental.pallas import tpu as pltpu


# ---------------------------------------------------------------------------
# Pallas kernel: the serial recurrence for ONE layer, one time-chunk per
# grid step.  Inputs are the precomputed x-side gate pre-activations.
# ---------------------------------------------------------------------------
def _lstm_recurrence_kernel(gx_ref, whh_ref, h_out_ref, h_sc, c_sc):
    # gx_ref   : (Tc, B, 4H)  precomputed  x_t @ W_ih  for this chunk
    # whh_ref  : (H, 4H)      recurrent weights (resident, constant index_map)
    # h_out_ref: (Tc, B, H)   hidden states emitted for this chunk
    # h_sc,c_sc: (B, H)       state carried across grid steps (VMEM scratch)
    Tc = gx_ref.shape[0]
    H = whh_ref.shape[0]

    @pl.when(pl.program_id(0) == 0)
    def _():  # PyTorch default: zero initial hidden / cell state
        h_sc[...] = jnp.zeros_like(h_sc)
        c_sc[...] = jnp.zeros_like(c_sc)

    whh = whh_ref[...]          # load once per chunk
    h = h_sc[...]               # keep state in vregs across the unrolled loop
    c = c_sc[...]

    for tt in range(Tc):        # statically unrolled; all indices constant
        gates = gx_ref[tt] + jnp.dot(h, whh, preferred_element_type=jnp.float32)
        i_g = jax.nn.sigmoid(gates[:, 0 * H:1 * H])
        f_g = jax.nn.sigmoid(gates[:, 1 * H:2 * H])
        g_g = jnp.tanh(gates[:, 2 * H:3 * H])
        o_g = jax.nn.sigmoid(gates[:, 3 * H:4 * H])
        c = f_g * c + i_g * g_g
        h = o_g * jnp.tanh(c)
        h_out_ref[tt] = h.astype(h_out_ref.dtype)

    h_sc[...] = h               # write carried state back once per chunk
    c_sc[...] = c


def _pick_time_chunk(T, max_chunk=32):
    """Largest divisor of T that is <= max_chunk (bounds unroll size)."""
    if T <= max_chunk:
        return T
    for tc in range(max_chunk, 0, -1):
        if T % tc == 0:
            return tc
    return 1


def _lstm_recurrence(gates_x, w_hh_t, *, time_chunk):
    """gates_x: (T, B, 4H) f32, w_hh_t: (H, 4H) f32 -> h_seq (T, B, H) f32."""
    T, B, G = gates_x.shape
    H = w_hh_t.shape[0]
    Tc = time_chunk
    assert T % Tc == 0

    return pl.pallas_call(
        _lstm_recurrence_kernel,
        out_shape=jax.ShapeDtypeStruct((T, B, H), jnp.float32),
        grid_spec=pltpu.PrefetchScalarGridSpec(
            num_scalar_prefetch=0,
            grid=(T // Tc,),
            in_specs=[
                pl.BlockSpec((Tc, B, G), lambda t: (t, 0, 0)),   # time chunk
                pl.BlockSpec((H, G), lambda t: (0, 0)),          # resident W_hh
            ],
            out_specs=pl.BlockSpec((Tc, B, H), lambda t: (t, 0, 0)),
            scratch_shapes=[
                pltpu.VMEM((B, H), jnp.float32),   # h state
                pltpu.VMEM((B, H), jnp.float32),   # c state
            ],
        ),
        compiler_params=pltpu.CompilerParams(
            dimension_semantics=("arbitrary",),        # time is sequential
            vmem_limit_bytes=64 * 1024 * 1024,         # raise v5e's 16 MiB default
        ),
    )(gates_x, w_hh_t)


# ---------------------------------------------------------------------------
# Public forward: stacked LSTM + Linear, batch_first I/O like PyTorch.
# ---------------------------------------------------------------------------
def base_lstm_forward(x, params, *, hidden_dim, num_layers, out_dim,
                      time_chunk=None):
    """x: (B, T, in_dim) f32 -> (B, T, out_dim) f32."""
    B, T, _ = x.shape
    H = hidden_dim
    Tc = _pick_time_chunk(T) if time_chunk is None else time_chunk

    # Go time-major once on the narrowest array (in_dim-wide); everything
    # downstream then uses pure leading-axis indexing and reshaped GEMMs.
    inp = jnp.transpose(x, (1, 0, 2))  # (T, B, D)

    for l in range(num_layers):
        w_ih_t, w_hh_t = params["layers"][l]        # (D_in_l, 4H), (H, 4H)
        d_in = inp.shape[-1]
        # Hoisted input projection: one big MXU-friendly GEMM (M = T*B).
        gates_x = jnp.dot(
            inp.reshape(T * B, d_in), w_ih_t,
            precision=lax.Precision.HIGHEST,
        ).reshape(T, B, 4 * H)
        # Serial recurrence (only h @ W_hh stays on the critical path).
        inp = _lstm_recurrence(gates_x, w_hh_t, time_chunk=Tc)   # (T, B, H)

    # Final Linear hoisted out of the recurrence: one dense GEMM + bias.
    y = jnp.dot(inp.reshape(T * B, H), params["w_lin_t"],
                precision=lax.Precision.HIGHEST) + params["b_lin"]
    return jnp.transpose(y.reshape(T, B, out_dim), (1, 0, 2))     # (B, T, out)


# ---------------------------------------------------------------------------
# Deterministic parameter init (mimics PyTorch U(-1/sqrt(H), 1/sqrt(H)))
# ---------------------------------------------------------------------------
def init_params(key, in_dim, hidden_dim, num_layers, out_dim):
    H = hidden_dim
    bound = 1.0 / jnp.sqrt(H)
    layers = []
    for l in range(num_layers):
        d_in = in_dim if l == 0 else H
        key, k1, k2 = jax.random.split(key, 3)
        # PyTorch stores weight_ih as (4H, d_in); pre-transposed to (d_in, 4H).
        w_ih_t = jax.random.uniform(k1, (d_in, 4 * H), jnp.float32, -bound, bound)
        w_hh_t = jax.random.uniform(k2, (H, 4 * H), jnp.float32, -bound, bound)
        layers.append((w_ih_t, w_hh_t))
    key, k3, k4 = jax.random.split(key, 3)
    lin_bound = 1.0 / jnp.sqrt(H)
    w_lin_t = jax.random.uniform(k3, (H, out_dim), jnp.float32, -lin_bound, lin_bound)
    b_lin = jax.random.uniform(k4, (1, out_dim), jnp.float32, -lin_bound, lin_bound)
    return {"layers": layers, "w_lin_t": w_lin_t, "b_lin": b_lin}


# ---------------------------------------------------------------------------
# Pure-JAX reference (for correctness check)
# ---------------------------------------------------------------------------
def ref_forward(x, params, *, hidden_dim, num_layers):
    B, T, _ = x.shape
    H = hidden_dim
    inp = x
    for l in range(num_layers):
        w_ih_t, w_hh_t = params["layers"][l]

        def step(carry, x_t):
            h, c = carry
            gates = (jnp.dot(x_t, w_ih_t, precision=lax.Precision.HIGHEST)
                     + jnp.dot(h, w_hh_t, precision=lax.Precision.HIGHEST))
            i = jax.nn.sigmoid(gates[:, 0 * H:1 * H])
            f = jax.nn.sigmoid(gates[:, 1 * H:2 * H])
            g = jnp.tanh(gates[:, 2 * H:3 * H])
            o = jax.nn.sigmoid(gates[:, 3 * H:4 * H])
            c = f * c + i * g
            h = o * jnp.tanh(c)
            return (h, c), h

        init = (jnp.zeros((B, H), jnp.float32), jnp.zeros((B, H), jnp.float32))
        _, ys = lax.scan(step, init, jnp.transpose(inp, (1, 0, 2)))
        inp = jnp.transpose(ys, (1, 0, 2))
    return (jnp.dot(inp, params["w_lin_t"], precision=lax.Precision.HIGHEST)
            + params["b_lin"])


# ---------------------------------------------------------------------------
if __name__ == "__main__":
    B, T = 2, 8
    in_dim, hidden_dim, num_layers, out_dim = 16, 32, 2, 8

    key = jax.random.PRNGKey(0)
    key, kx = jax.random.split(key)
    x = jax.random.normal(kx, (B, T, in_dim), jnp.float32)

    params = init_params(key, in_dim, hidden_dim, num_layers, out_dim)

    fwd = jax.jit(functools.partial(
        base_lstm_forward,
        hidden_dim=hidden_dim,
        num_layers=num_layers,
        out_dim=out_dim,
    ))
    out = jax.block_until_ready(fwd(x, params))
    assert out.shape == (B, T, out_dim), out.shape

    ref = jax.block_until_ready(
        ref_forward(x, params, hidden_dim=hidden_dim, num_layers=num_layers)
    )
    err = float(jnp.max(jnp.abs(out - ref)))
    assert err < 5e-5, err

    print("KERNEL_OK")
</pallas_src>

<mosaic_0001>
module attributes {stable_mosaic.version = 11 : i64} {
  func.func @_lstm_recurrence_kernel(%arg0: i32, %arg1: memref<8x2x128xf32, #tpu.memory_space<vmem>>, %arg2: memref<32x128xf32, #tpu.memory_space<vmem>>, %arg3: memref<8x2x32xf32, #tpu.memory_space<vmem>>, %arg4: memref<2x32xf32, #tpu.memory_space<vmem>>, %arg5: memref<2x32xf32, #tpu.memory_space<vmem>>) attributes {dimension_semantics = [#tpu.dimension_semantics<arbitrary>], iteration_bounds = array<i64: 1>, scalar_prefetch = 0 : i64, scratch_operands = 2 : i64, tpu.core_type = #tpu.core_type<tc>, window_params = [{transform_indices = @transform_0, window_bounds = array<i64: 8, 2, 128>}, {pipeline_mode = #tpu.pipeline_mode<synchronous>, transform_indices = @transform_1, window_bounds = array<i64: 32, 128>}, {transform_indices = @transform_2, window_bounds = array<i64: 8, 2, 32>}]} {
    %c0_i32 = arith.constant 0 : i32
    %0 = arith.cmpi eq, %arg0, %c0_i32 : i32
    %1 = arith.extui %0 : i1 to i32
    %c0_i32_0 = arith.constant 0 : i32
    %2 = arith.cmpi ne, %1, %c0_i32_0 : i32
    scf.if %2 {
      %cst_82 = arith.constant 0.000000e+00 : f32
      %264 = vector.broadcast %cst_82 : f32 to vector<2x32xf32>
      %c0_83 = arith.constant 0 : index
      %c0_84 = arith.constant 0 : index
      %265 = vector.load %arg4[%c0_83, %c0_84] : memref<2x32xf32, #tpu.memory_space<vmem>>, vector<2x32xf32>
      tpu.vector_store %arg4[%c0_83, %c0_84], %264 {strides = array<i32>} : memref<2x32xf32, #tpu.memory_space<vmem>>, vector<2x32xf32>,
      %cst_85 = arith.constant 0.000000e+00 : f32
      %266 = vector.broadcast %cst_85 : f32 to vector<2x32xf32>
      %c0_86 = arith.constant 0 : index
      %c0_87 = arith.constant 0 : index
      %267 = vector.load %arg5[%c0_86, %c0_87] : memref<2x32xf32, #tpu.memory_space<vmem>>, vector<2x32xf32>
      tpu.vector_store %arg5[%c0_86, %c0_87], %266 {strides = array<i32>} : memref<2x32xf32, #tpu.memory_space<vmem>>, vector<2x32xf32>,
    } else {
    }
    %c0 = arith.constant 0 : index
    %c0_1 = arith.constant 0 : index
    %3 = vector.load %arg2[%c0, %c0_1] : memref<32x128xf32, #tpu.memory_space<vmem>>, vector<32x128xf32>
    %c0_2 = arith.constant 0 : index
    %c0_3 = arith.constant 0 : index
    %4 = vector.load %arg4[%c0_2, %c0_3] : memref<2x32xf32, #tpu.memory_space<vmem>>, vector<2x32xf32>
    %c0_4 = arith.constant 0 : index
    %c0_5 = arith.constant 0 : index
    %5 = vector.load %arg5[%c0_4, %c0_5] : memref<2x32xf32, #tpu.memory_space<vmem>>, vector<2x32xf32>
    %c0_6 = arith.constant 0 : index
    %c0_7 = arith.constant 0 : index
    %c0_8 = arith.constant 0 : index
    %6 = vector.load %arg1[%c0_6, %c0_7, %c0_8] : memref<8x2x128xf32, #tpu.memory_space<vmem>>, vector<1x2x128xf32>
    %7 = vector.shape_cast %6 : vector<1x2x128xf32> to vector<2x128xf32>
    %cst = arith.constant dense<0.000000e+00> : vector<2x128xf32>
    %8 = tpu.matmul %4, %3, %cst {dimension_numbers = #tpu.dot_dimension_numbers<[1], [0], [0], [1], [0, 0, 1, 1], [], []>} : vector<2x32xf32>, vector<32x128xf32>, vector<2x128xf32> -> vector<2x128xf32>
    %9 = arith.addf %7, %8 : vector<2x128xf32>
    %10 = vector.extract_strided_slice %9 {offsets = [0, 0], sizes = [2, 32], strides = [1, 1]} : vector<2x128xf32> to vector<2x32xf32>
    %11 = arith.negf %10 : vector<2x32xf32>
    %12 = math.exp %11 : vector<2x32xf32>
    %cst_9 = arith.constant 1.000000e+00 : f32
    %13 = vector.broadcast %cst_9 : f32 to vector<2x32xf32>
    %14 = arith.addf %13, %12 : vector<2x32xf32>
    %15 = arith.divf %13, %14 : vector<2x32xf32>
    %16 = vector.extract_strided_slice %9 {offsets = [0, 32], sizes = [2, 32], strides = [1, 1]} : vector<2x128xf32> to vector<2x32xf32>
    %17 = arith.negf %16 : vector<2x32xf32>
    %18 = math.exp %17 : vector<2x32xf32>
    %cst_10 = arith.constant 1.000000e+00 : f32
    %19 = vector.broadcast %cst_10 : f32 to vector<2x32xf32>
    %20 = arith.addf %19, %18 : vector<2x32xf32>
    %21 = arith.divf %19, %20 : vector<2x32xf32>
    %22 = vector.extract_strided_slice %9 {offsets = [0, 64], sizes = [2, 32], strides = [1, 1]} : vector<2x128xf32> to vector<2x32xf32>
    %23 = math.tanh %22 : vector<2x32xf32>
    %24 = vector.extract_strided_slice %9 {offsets = [0, 96], sizes = [2, 32], strides = [1, 1]} : vector<2x128xf32> to vector<2x32xf32>
    %25 = arith.negf %24 : vector<2x32xf32>
    %26 = math.exp %25 : vector<2x32xf32>
    %cst_11 = arith.constant 1.000000e+00 : f32
    %27 = vector.broadcast %cst_11 : f32 to vector<2x32xf32>
    %28 = arith.addf %27, %26 : vector<2x32xf32>
    %29 = arith.divf %27, %28 : vector<2x32xf32>
    %30 = arith.mulf %21, %5 : vector<2x32xf32>
    %31 = arith.mulf %15, %23 : vector<2x32xf32>
    %32 = arith.addf %30, %31 : vector<2x32xf32>
    %33 = math.tanh %32 : vector<2x32xf32>
    %34 = arith.mulf %29, %33 : vector<2x32xf32>
    %c0_12 = arith.constant 0 : index
    %c0_13 = arith.constant 0 : index
    %c0_14 = arith.constant 0 : index
    %35 = vector.load %arg3[%c0_12, %c0_13, %c0_14] : memref<8x2x32xf32, #tpu.memory_space<vmem>>, vector<1x2x32xf32>
    %36 = vector.shape_cast %35 : vector<1x2x32xf32> to vector<2x32xf32>
    %37 = vector.shape_cast %34 : vector<2x32xf32> to vector<1x2x32xf32>
    tpu.vector_store %arg3[%c0_12, %c0_13, %c0_14], %37 {strides = array<i32>} : memref<8x2x32xf32, #tpu.memory_space<vmem>>, vector<1x2x32xf32>,
    %c1 = arith.constant 1 : index
    %c0_15 = arith.constant 0 : index
    %c0_16 = arith.constant 0 : index
    %38 = vector.load %arg1[%c1, %c0_15, %c0_16] : memref<8x2x128xf32, #tpu.memory_space<vmem>>, vector<1x2x128xf32>
    %39 = vector.shape_cast %38 : vector<1x2x128xf32> to vector<2x128xf32>
    %cst_17 = arith.constant dense<0.000000e+00> : vector<2x128xf32>
    %40 = tpu.matmul %34, %3, %cst_17 {dimension_numbers = #tpu.dot_dimension_numbers<[1], [0], [0], [1], [0, 0, 1, 1], [], []>} : vector<2x32xf32>, vector<32x128xf32>, vector<2x128xf32> -> vector<2x128xf32>
    %41 = arith.addf %39, %40 : vector<2x128xf32>
    %42 = vector.extract_strided_slice %41 {offsets = [0, 0], sizes = [2, 32], strides = [1, 1]} : vector<2x128xf32> to vector<2x32xf32>
    %43 = arith.negf %42 : vector<2x32xf32>
    %44 = math.exp %43 : vector<2x32xf32>
    %cst_18 = arith.constant 1.000000e+00 : f32
    %45 = vector.broadcast %cst_18 : f32 to vector<2x32xf32>
    %46 = arith.addf %45, %44 : vector<2x32xf32>
    %47 = arith.divf %45, %46 : vector<2x32xf32>
    %48 = vector.extract_strided_slice %41 {offsets = [0, 32], sizes = [2, 32], strides = [1, 1]} : vector<2x128xf32> to vector<2x32xf32>
    %49 = arith.negf %48 : vector<2x32xf32>
    %50 = math.exp %49 : vector<2x32xf32>
    %cst_19 = arith.constant 1.000000e+00 : f32
    %51 = vector.broadcast %cst_19 : f32 to vector<2x32xf32>
    %52 = arith.addf %51, %50 : vector<2x32xf32>
    %53 = arith.divf %51, %52 : vector<2x32xf32>
    %54 = vector.extract_strided_slice %41 {offsets = [0, 64], sizes = [2, 32], strides = [1, 1]} : vector<2x128xf32> to vector<2x32xf32>
    %55 = math.tanh %54 : vector<2x32xf32>
    %56 = vector.extract_strided_slice %41 {offsets = [0, 96], sizes = [2, 32], strides = [1, 1]} : vector<2x128xf32> to vector<2x32xf32>
    %57 = arith.negf %56 : vector<2x32xf32>
    %58 = math.exp %57 : vector<2x32xf32>
    %cst_20 = arith.constant 1.000000e+00 : f32
    %59 = vector.broadcast %cst_20 : f32 to vector<2x32xf32>
    %60 = arith.addf %59, %58 : vector<2x32xf32>
    %61 = arith.divf %59, %60 : vector<2x32xf32>
    %62 = arith.mulf %53, %32 : vector<2x32xf32>
    %63 = arith.mulf %47, %55 : vector<2x32xf32>
    %64 = arith.addf %62, %63 : vector<2x32xf32>
    %65 = math.tanh %64 : vector<2x32xf32>
    %66 = arith.mulf %61, %65 : vector<2x32xf32>
    %c1_21 = arith.constant 1 : index
    %c0_22 = arith.constant 0 : index
    %c0_23 = arith.constant 0 : index
    %67 = vector.load %arg3[%c1_21, %c0_22, %c0_23] : memref<8x2x32xf32, #tpu.memory_space<vmem>>, vector<1x2x32xf32>
    %68 = vector.shape_cast %67 : vector<1x2x32xf32> to vector<2x32xf32>
    %69 = vector.shape_cast %66 : vector<2x32xf32> to vector<1x2x32xf32>
    tpu.vector_store %arg3[%c1_21, %c0_22, %c0_23], %69 {strides = array<i32>} : memref<8x2x32xf32, #tpu.memory_space<vmem>>, vector<1x2x32xf32>,
    %c2 = arith.constant 2 : index
    %c0_24 = arith.constant 0 : index
    %c0_25 = arith.constant 0 : index
    %70 = vector.load %arg1[%c2, %c0_24, %c0_25] : memref<8x2x128xf32, #tpu.memory_space<vmem>>, vector<1x2x128xf32>
    %71 = vector.shape_cast %70 : vector<1x2x128xf32> to vector<2x128xf32>
    %cst_26 = arith.constant dense<0.000000e+00> : vector<2x128xf32>
    %72 = tpu.matmul %66, %3, %cst_26 {dimension_numbers = #tpu.dot_dimension_numbers<[1], [0], [0], [1], [0, 0, 1, 1], [], []>} : vector<2x32xf32>, vector<32x128xf32>, vector<2x128xf32> -> vector<2x128xf32>
    %73 = arith.addf %71, %72 : vector<2x128xf32>
    %74 = vector.extract_strided_slice %73 {offsets = [0, 0], sizes = [2, 32], strides = [1, 1]} : vector<2x128xf32> to vector<2x32xf32>
    %75 = arith.negf %74 : vector<2x32xf32>
    %76 = math.exp %75 : vector<2x32xf32>
    %cst_27 = arith.constant 1.000000e+00 : f32
    %77 = vector.broadcast %cst_27 : f32 to vector<2x32xf32>
    %78 = arith.addf %77, %76 : vector<2x32xf32>
    %79 = arith.divf %77, %78 : vector<2x32xf32>
    %80 = vector.extract_strided_slice %73 {offsets = [0, 32], sizes = [2, 32], strides = [1, 1]} : vector<2x128xf32> to vector<2x32xf32>
    %81 = arith.negf %80 : vector<2x32xf32>
    %82 = math.exp %81 : vector<2x32xf32>
    %cst_28 = arith.constant 1.000000e+00 : f32
    %83 = vector.broadcast %cst_28 : f32 to vector<2x32xf32>
    %84 = arith.addf %83, %82 : vector<2x32xf32>
    %85 = arith.divf %83, %84 : vector<2x32xf32>
    %86 = vector.extract_strided_slice %73 {offsets = [0, 64], sizes = [2, 32], strides = [1, 1]} : vector<2x128xf32> to vector<2x32xf32>
    %87 = math.tanh %86 : vector<2x32xf32>
    %88 = vector.extract_strided_slice %73 {offsets = [0, 96], sizes = [2, 32], strides = [1, 1]} : vector<2x128xf32> to vector<2x32xf32>
    %89 = arith.negf %88 : vector<2x32xf32>
    %90 = math.exp %89 : vector<2x32xf32>
    %cst_29 = arith.constant 1.000000e+00 : f32
    %91 = vector.broadcast %cst_29 : f32 to vector<2x32xf32>
    %92 = arith.addf %91, %90 : vector<2x32xf32>
    %93 = arith.divf %91, %92 : vector<2x32xf32>
    %94 = arith.mulf %85, %64 : vector<2x32xf32>
    %95 = arith.mulf %79, %87 : vector<2x32xf32>
    %96 = arith.addf %94, %95 : vector<2x32xf32>
    %97 = math.tanh %96 : vector<2x32xf32>
    %98 = arith.mulf %93, %97 : vector<2x32xf32>
    %c2_30 = arith.constant 2 : index
    %c0_31 = arith.constant 0 : index
    %c0_32 = arith.constant 0 : index
    %99 = vector.load %arg3[%c2_30, %c0_31, %c0_32] : memref<8x2x32xf32, #tpu.memory_space<vmem>>, vector<1x2x32xf32>
    %100 = vector.shape_cast %99 : vector<1x2x32xf32> to vector<2x32xf32>
    %101 = vector.shape_cast %98 : vector<2x32xf32> to vector<1x2x32xf32>
    tpu.vector_store %arg3[%c2_30, %c0_31, %c0_32], %101 {strides = array<i32>} : memref<8x2x32xf32, #tpu.memory_space<vmem>>, vector<1x2x32xf32>,
    %c3 = arith.constant 3 : index
    %c0_33 = arith.constant 0 : index
    %c0_34 = arith.constant 0 : index
    %102 = vector.load %arg1[%c3, %c0_33, %c0_34] : memref<8x2x128xf32, #tpu.memory_space<vmem>>, vector<1x2x128xf32>
    %103 = vector.shape_cast %102 : vector<1x2x128xf32> to vector<2x128xf32>
    %cst_35 = arith.constant dense<0.000000e+00> : vector<2x128xf32>
    %104 = tpu.matmul %98, %3, %cst_35 {dimension_numbers = #tpu.dot_dimension_numbers<[1], [0], [0], [1], [0, 0, 1, 1], [], []>} : vector<2x32xf32>, vector<32x128xf32>, vector<2x128xf32> -> vector<2x128xf32>
    %105 = arith.addf %103, %104 : vector<2x128xf32>
    %106 = vector.extract_strided_slice %105 {offsets = [0, 0], sizes = [2, 32], strides = [1, 1]} : vector<2x128xf32> to vector<2x32xf32>
    %107 = arith.negf %106 : vector<2x32xf32>
    %108 = math.exp %107 : vector<2x32xf32>
    %cst_36 = arith.constant 1.000000e+00 : f32
    %109 = vector.broadcast %cst_36 : f32 to vector<2x32xf32>
    %110 = arith.addf %109, %108 : vector<2x32xf32>
    %111 = arith.divf %109, %110 : vector<2x32xf32>
    %112 = vector.extract_strided_slice %105 {offsets = [0, 32], sizes = [2, 32], strides = [1, 1]} : vector<2x128xf32> to vector<2x32xf32>
    %113 = arith.negf %112 : vector<2x32xf32>
    %114 = math.exp %113 : vector<2x32xf32>
    %cst_37 = arith.constant 1.000000e+00 : f32
    %115 = vector.broadcast %cst_37 : f32 to vector<2x32xf32>
    %116 = arith.addf %115, %114 : vector<2x32xf32>
    %117 = arith.divf %115, %116 : vector<2x32xf32>
    %118 = vector.extract_strided_slice %105 {offsets = [0, 64], sizes = [2, 32], strides = [1, 1]} : vector<2x128xf32> to vector<2x32xf32>
    %119 = math.tanh %118 : vector<2x32xf32>
    %120 = vector.extract_strided_slice %105 {offsets = [0, 96], sizes = [2, 32], strides = [1, 1]} : vector<2x128xf32> to vector<2x32xf32>
    %121 = arith.negf %120 : vector<2x32xf32>
    %122 = math.exp %121 : vector<2x32xf32>
    %cst_38 = arith.constant 1.000000e+00 : f32
    %123 = vector.broadcast %cst_38 : f32 to vector<2x32xf32>
    %124 = arith.addf %123, %122 : vector<2x32xf32>
    %125 = arith.divf %123, %124 : vector<2x32xf32>
    %126 = arith.mulf %117, %96 : vector<2x32xf32>
    %127 = arith.mulf %111, %119 : vector<2x32xf32>
    %128 = arith.addf %126, %127 : vector<2x32xf32>
    %129 = math.tanh %128 : vector<2x32xf32>
    %130 = arith.mulf %125, %129 : vector<2x32xf32>
    %c3_39 = arith.constant 3 : index
    %c0_40 = arith.constant 0 : index
    %c0_41 = arith.constant 0 : index
    %131 = vector.load %arg3[%c3_39, %c0_40, %c0_41] : memref<8x2x32xf32, #tpu.memory_space<vmem>>, vector<1x2x32xf32>
    %132 = vector.shape_cast %131 : vector<1x2x32xf32> to vector<2x32xf32>
    %133 = vector.shape_cast %130 : vector<2x32xf32> to vector<1x2x32xf32>
    tpu.vector_store %arg3[%c3_39, %c0_40, %c0_41], %133 {strides = array<i32>} : memref<8x2x32xf32, #tpu.memory_space<vmem>>, vector<1x2x32xf32>,
    %c4 = arith.constant 4 : index
    %c0_42 = arith.constant 0 : index
    %c0_43 = arith.constant 0 : index
    %134 = vector.load %arg1[%c4, %c0_42, %c0_43] : memref<8x2x128xf32, #tpu.memory_space<vmem>>, vector<1x2x128xf32>
    %135 = vector.shape_cast %134 : vector<1x2x128xf32> to vector<2x128xf32>
    %cst_44 = arith.constant dense<0.000000e+00> : vector<2x128xf32>
    %136 = tpu.matmul %130, %3, %cst_44 {dimension_numbers = #tpu.dot_dimension_numbers<[1], [0], [0], [1], [0, 0, 1, 1], [], []>} : vector<2x32xf32>, vector<32x128xf32>, vector<2x128xf32> -> vector<2x128xf32>
    %137 = arith.addf %135, %136 : vector<2x128xf32>
    %138 = vector.extract_strided_slice %137 {offsets = [0, 0], sizes = [2, 32], strides = [1, 1]} : vector<2x128xf32> to vector<2x32xf32>
    %139 = arith.negf %138 : vector<2x32xf32>
    %140 = math.exp %139 : vector<2x32xf32>
    %cst_45 = arith.constant 1.000000e+00 : f32
    %141 = vector.broadcast %cst_45 : f32 to vector<2x32xf32>
    %142 = arith.addf %141, %140 : vector<2x32xf32>
    %143 = arith.divf %141, %142 : vector<2x32xf32>
    %144 = vector.extract_strided_slice %137 {offsets = [0, 32], sizes = [2, 32], strides = [1, 1]} : vector<2x128xf32> to vector<2x32xf32>
    %145 = arith.negf %144 : vector<2x32xf32>
    %146 = math.exp %145 : vector<2x32xf32>
    %cst_46 = arith.constant 1.000000e+00 : f32
    %147 = vector.broadcast %cst_46 : f32 to vector<2x32xf32>
    %148 = arith.addf %147, %146 : vector<2x32xf32>
    %149 = arith.divf %147, %148 : vector<2x32xf32>
    %150 = vector.extract_strided_slice %137 {offsets = [0, 64], sizes = [2, 32], strides = [1, 1]} : vector<2x128xf32> to vector<2x32xf32>
    %151 = math.tanh %150 : vector<2x32xf32>
    %152 = vector.extract_strided_slice %137 {offsets = [0, 96], sizes = [2, 32], strides = [1, 1]} : vector<2x128xf32> to vector<2x32xf32>
    %153 = arith.negf %152 : vector<2x32xf32>
    %154 = math.exp %153 : vector<2x32xf32>
    %cst_47 = arith.constant 1.000000e+00 : f32
    %155 = vector.broadcast %cst_47 : f32 to vector<2x32xf32>
    %156 = arith.addf %155, %154 : vector<2x32xf32>
    %157 = arith.divf %155, %156 : vector<2x32xf32>
    %158 = arith.mulf %149, %128 : vector<2x32xf32>
    %159 = arith.mulf %143, %151 : vector<2x32xf32>
    %160 = arith.addf %158, %159 : vector<2x32xf32>
    %161 = math.tanh %160 : vector<2x32xf32>
    %162 = arith.mulf %157, %161 : vector<2x32xf32>
    %c4_48 = arith.constant 4 : index
    %c0_49 = arith.constant 0 : index
    %c0_50 = arith.constant 0 : index
    %163 = vector.load %arg3[%c4_48, %c0_49, %c0_50] : memref<8x2x32xf32, #tpu.memory_space<vmem>>, vector<1x2x32xf32>
    %164 = vector.shape_cast %163 : vector<1x2x32xf32> to vector<2x32xf32>
    %165 = vector.shape_cast %162 : vector<2x32xf32> to vector<1x2x32xf32>
    tpu.vector_store %arg3[%c4_48, %c0_49, %c0_50], %165 {strides = array<i32>} : memref<8x2x32xf32, #tpu.memory_space<vmem>>, vector<1x2x32xf32>,
    %c5 = arith.constant 5 : index
    %c0_51 = arith.constant 0 : index
    %c0_52 = arith.constant 0 : index
    %166 = vector.load %arg1[%c5, %c0_51, %c0_52] : memref<8x2x128xf32, #tpu.memory_space<vmem>>, vector<1x2x128xf32>
    %167 = vector.shape_cast %166 : vector<1x2x128xf32> to vector<2x128xf32>
    %cst_53 = arith.constant dense<0.000000e+00> : vector<2x128xf32>
    %168 = tpu.matmul %162, %3, %cst_53 {dimension_numbers = #tpu.dot_dimension_numbers<[1], [0], [0], [1], [0, 0, 1, 1], [], []>} : vector<2x32xf32>, vector<32x128xf32>, vector<2x128xf32> -> vector<2x128xf32>
    %169 = arith.addf %167, %168 : vector<2x128xf32>
    %170 = vector.extract_strided_slice %169 {offsets = [0, 0], sizes = [2, 32], strides = [1, 1]} : vector<2x128xf32> to vector<2x32xf32>
    %171 = arith.negf %170 : vector<2x32xf32>
    %172 = math.exp %171 : vector<2x32xf32>
    %cst_54 = arith.constant 1.000000e+00 : f32
    %173 = vector.broadcast %cst_54 : f32 to vector<2x32xf32>
    %174 = arith.addf %173, %172 : vector<2x32xf32>
    %175 = arith.divf %173, %174 : vector<2x32xf32>
    %176 = vector.extract_strided_slice %169 {offsets = [0, 32], sizes = [2, 32], strides = [1, 1]} : vector<2x128xf32> to vector<2x32xf32>
    %177 = arith.negf %176 : vector<2x32xf32>
    %178 = math.exp %177 : vector<2x32xf32>
    %cst_55 = arith.constant 1.000000e+00 : f32
    %179 = vector.broadcast %cst_55 : f32 to vector<2x32xf32>
    %180 = arith.addf %179, %178 : vector<2x32xf32>
    %181 = arith.divf %179, %180 : vector<2x32xf32>
    %182 = vector.extract_strided_slice %169 {offsets = [0, 64], sizes = [2, 32], strides = [1, 1]} : vector<2x128xf32> to vector<2x32xf32>
    %183 = math.tanh %182 : vector<2x32xf32>
    %184 = vector.extract_strided_slice %169 {offsets = [0, 96], sizes = [2, 32], strides = [1, 1]} : vector<2x128xf32> to vector<2x32xf32>
    %185 = arith.negf %184 : vector<2x32xf32>
    %186 = math.exp %185 : vector<2x32xf32>
    %cst_56 = arith.constant 1.000000e+00 : f32
    %187 = vector.broadcast %cst_56 : f32 to vector<2x32xf32>
    %188 = arith.addf %187, %186 : vector<2x32xf32>
    %189 = arith.divf %187, %188 : vector<2x32xf32>
    %190 = arith.mulf %181, %160 : vector<2x32xf32>
    %191 = arith.mulf %175, %183 : vector<2x32xf32>
    %192 = arith.addf %190, %191 : vector<2x32xf32>
    %193 = math.tanh %192 : vector<2x32xf32>
    %194 = arith.mulf %189, %193 : vector<2x32xf32>
    %c5_57 = arith.constant 5 : index
    %c0_58 = arith.constant 0 : index
    %c0_59 = arith.constant 0 : index
    %195 = vector.load %arg3[%c5_57, %c0_58, %c0_59] : memref<8x2x32xf32, #tpu.memory_space<vmem>>, vector<1x2x32xf32>
    %196 = vector.shape_cast %195 : vector<1x2x32xf32> to vector<2x32xf32>
    %197 = vector.shape_cast %194 : vector<2x32xf32> to vector<1x2x32xf32>
    tpu.vector_store %arg3[%c5_57, %c0_58, %c0_59], %197 {strides = array<i32>} : memref<8x2x32xf32, #tpu.memory_space<vmem>>, vector<1x2x32xf32>,
    %c6 = arith.constant 6 : index
    %c0_60 = arith.constant 0 : index
    %c0_61 = arith.constant 0 : index
    %198 = vector.load %arg1[%c6, %c0_60, %c0_61] : memref<8x2x128xf32, #tpu.memory_space<vmem>>, vector<1x2x128xf32>
    %199 = vector.shape_cast %198 : vector<1x2x128xf32> to vector<2x128xf32>
    %cst_62 = arith.constant dense<0.000000e+00> : vector<2x128xf32>
    %200 = tpu.matmul %194, %3, %cst_62 {dimension_numbers = #tpu.dot_dimension_numbers<[1], [0], [0], [1], [0, 0, 1, 1], [], []>} : vector<2x32xf32>, vector<32x128xf32>, vector<2x128xf32> -> vector<2x128xf32>
    %201 = arith.addf %199, %200 : vector<2x128xf32>
    %202 = vector.extract_strided_slice %201 {offsets = [0, 0], sizes = [2, 32], strides = [1, 1]} : vector<2x128xf32> to vector<2x32xf32>
    %203 = arith.negf %202 : vector<2x32xf32>
    %204 = math.exp %203 : vector<2x32xf32>
    %cst_63 = arith.constant 1.000000e+00 : f32
    %205 = vector.broadcast %cst_63 : f32 to vector<2x32xf32>
    %206 = arith.addf %205, %204 : vector<2x32xf32>
    %207 = arith.divf %205, %206 : vector<2x32xf32>
    %208 = vector.extract_strided_slice %201 {offsets = [0, 32], sizes = [2, 32], strides = [1, 1]} : vector<2x128xf32> to vector<2x32xf32>
    %209 = arith.negf %208 : vector<2x32xf32>
    %210 = math.exp %209 : vector<2x32xf32>
    %cst_64 = arith.constant 1.000000e+00 : f32
    %211 = vector.broadcast %cst_64 : f32 to vector<2x32xf32>
    %212 = arith.addf %211, %210 : vector<2x32xf32>
    %213 = arith.divf %211, %212 : vector<2x32xf32>
    %214 = vector.extract_strided_slice %201 {offsets = [0, 64], sizes = [2, 32], strides = [1, 1]} : vector<2x128xf32> to vector<2x32xf32>
    %215 = math.tanh %214 : vector<2x32xf32>
    %216 = vector.extract_strided_slice %201 {offsets = [0, 96], sizes = [2, 32], strides = [1, 1]} : vector<2x128xf32> to vector<2x32xf32>
    %217 = arith.negf %216 : vector<2x32xf32>
    %218 = math.exp %217 : vector<2x32xf32>
    %cst_65 = arith.constant 1.000000e+00 : f32
    %219 = vector.broadcast %cst_65 : f32 to vector<2x32xf32>
    %220 = arith.addf %219, %218 : vector<2x32xf32>
    %221 = arith.divf %219, %220 : vector<2x32xf32>
    %222 = arith.mulf %213, %192 : vector<2x32xf32>
    %223 = arith.mulf %207, %215 : vector<2x32xf32>
    %224 = arith.addf %222, %223 : vector<2x32xf32>
    %225 = math.tanh %224 : vector<2x32xf32>
    %226 = arith.mulf %221, %225 : vector<2x32xf32>
    %c6_66 = arith.constant 6 : index
    %c0_67 = arith.constant 0 : index
    %c0_68 = arith.constant 0 : index
    %227 = vector.load %arg3[%c6_66, %c0_67, %c0_68] : memref<8x2x32xf32, #tpu.memory_space<vmem>>, vector<1x2x32xf32>
    %228 = vector.shape_cast %227 : vector<1x2x32xf32> to vector<2x32xf32>
    %229 = vector.shape_cast %226 : vector<2x32xf32> to vector<1x2x32xf32>
    tpu.vector_store %arg3[%c6_66, %c0_67, %c0_68], %229 {strides = array<i32>} : memref<8x2x32xf32, #tpu.memory_space<vmem>>, vector<1x2x32xf32>,
    %c7 = arith.constant 7 : index
    %c0_69 = arith.constant 0 : index
    %c0_70 = arith.constant 0 : index
    %230 = vector.load %arg1[%c7, %c0_69, %c0_70] : memref<8x2x128xf32, #tpu.memory_space<vmem>>, vector<1x2x128xf32>
    %231 = vector.shape_cast %230 : vector<1x2x128xf32> to vector<2x128xf32>
    %cst_71 = arith.constant dense<0.000000e+00> : vector<2x128xf32>
    %232 = tpu.matmul %226, %3, %cst_71 {dimension_numbers = #tpu.dot_dimension_numbers<[1], [0], [0], [1], [0, 0, 1, 1], [], []>} : vector<2x32xf32>, vector<32x128xf32>, vector<2x128xf32> -> vector<2x128xf32>
    %233 = arith.addf %231, %232 : vector<2x128xf32>
    %234 = vector.extract_strided_slice %233 {offsets = [0, 0], sizes = [2, 32], strides = [1, 1]} : vector<2x128xf32> to vector<2x32xf32>
    %235 = arith.negf %234 : vector<2x32xf32>
    %236 = math.exp %235 : vector<2x32xf32>
    %cst_72 = arith.constant 1.000000e+00 : f32
    %237 = vector.broadcast %cst_72 : f32 to vector<2x32xf32>
    %238 = arith.addf %237, %236 : vector<2x32xf32>
    %239 = arith.divf %237, %238 : vector<2x32xf32>
    %240 = vector.extract_strided_slice %233 {offsets = [0, 32], sizes = [2, 32], strides = [1, 1]} : vector<2x128xf32> to vector<2x32xf32>
    %241 = arith.negf %240 : vector<2x32xf32>
    %242 = math.exp %241 : vector<2x32xf32>
    %cst_73 = arith.constant 1.000000e+00 : f32
    %243 = vector.broadcast %cst_73 : f32 to vector<2x32xf32>
    %244 = arith.addf %243, %242 : vector<2x32xf32>
    %245 = arith.divf %243, %244 : vector<2x32xf32>
    %246 = vector.extract_strided_slice %233 {offsets = [0, 64], sizes = [2, 32], strides = [1, 1]} : vector<2x128xf32> to vector<2x32xf32>
    %247 = math.tanh %246 : vector<2x32xf32>
    %248 = vector.extract_strided_slice %233 {offsets = [0, 96], sizes = [2, 32], strides = [1, 1]} : vector<2x128xf32> to vector<2x32xf32>
    %249 = arith.negf %248 : vector<2x32xf32>
    %250 = math.exp %249 : vector<2x32xf32>
    %cst_74 = arith.constant 1.000000e+00 : f32
    %251 = vector.broadcast %cst_74 : f32 to vector<2x32xf32>
    %252 = arith.addf %251, %250 : vector<2x32xf32>
    %253 = arith.divf %251, %252 : vector<2x32xf32>
    %254 = arith.mulf %245, %224 : vector<2x32xf32>
    %255 = arith.mulf %239, %247 : vector<2x32xf32>
    %256 = arith.addf %254, %255 : vector<2x32xf32>
    %257 = math.tanh %256 : vector<2x32xf32>
    %258 = arith.mulf %253, %257 : vector<2x32xf32>
    %c7_75 = arith.constant 7 : index
    %c0_76 = arith.constant 0 : index
    %c0_77 = arith.constant 0 : index
    %259 = vector.load %arg3[%c7_75, %c0_76, %c0_77] : memref<8x2x32xf32, #tpu.memory_space<vmem>>, vector<1x2x32xf32>
    %260 = vector.shape_cast %259 : vector<1x2x32xf32> to vector<2x32xf32>
    %261 = vector.shape_cast %258 : vector<2x32xf32> to vector<1x2x32xf32>
    tpu.vector_store %arg3[%c7_75, %c0_76, %c0_77], %261 {strides = array<i32>} : memref<8x2x32xf32, #tpu.memory_space<vmem>>, vector<1x2x32xf32>,
    %c0_78 = arith.constant 0 : index
    %c0_79 = arith.constant 0 : index
    %262 = vector.load %arg4[%c0_78, %c0_79] : memref<2x32xf32, #tpu.memory_space<vmem>>, vector<2x32xf32>
    tpu.vector_store %arg4[%c0_78, %c0_79], %258 {strides = array<i32>} : memref<2x32xf32, #tpu.memory_space<vmem>>, vector<2x32xf32>,
    %c0_80 = arith.constant 0 : index
    %c0_81 = arith.constant 0 : index
    %263 = vector.load %arg5[%c0_80, %c0_81] : memref<2x32xf32, #tpu.memory_space<vmem>>, vector<2x32xf32>
    tpu.vector_store %arg5[%c0_80, %c0_81], %256 {strides = array<i32>} : memref<2x32xf32, #tpu.memory_space<vmem>>, vector<2x32xf32>,
    return
  }
  func.func @transform_0(%arg0: i32) -> (i32, i32, i32) {
    %c0_i32 = arith.constant 0 : i32
    %c0_i32_0 = arith.constant 0 : i32
    %c0_i32_1 = arith.constant 0 : i32
    return %arg0, %c0_i32, %c0_i32_0 : i32, i32, i32
  }
  func.func @transform_1(%arg0: i32) -> (i32, i32) {
    %c0_i32 = arith.constant 0 : i32
    %c0_i32_0 = arith.constant 0 : i32
    %c0_i32_1 = arith.constant 0 : i32
    return %c0_i32, %c0_i32_0 : i32, i32
  }
  func.func @transform_2(%arg0: i32) -> (i32, i32, i32) {
    %c0_i32 = arith.constant 0 : i32
    %c0_i32_0 = arith.constant 0 : i32
    %c0_i32_1 = arith.constant 0 : i32
    return %arg0, %c0_i32, %c0_i32_0 : i32, i32, i32
  }
}

</mosaic_0001>

<bundles_post_ra>
// kernel: base_lstm_forward.2
= control target key start
LH: loop header
LB: loop body
LE: loop exit
PB: predicated region body
PF: predicated region fallthrough
CT: control target
= control target key end

     0   :  { %7 = vsyncpa [#allocation5], 0  ;;  %s1438_s0 = inlined_call_operand.hbm [shape: f32[8,2,128], index: 0, kind: input, shape index: {}]   ;;  %s1439_s1 = inlined_call_operand.hbm [shape: f32[32,128], index: 1, kind: input, shape index: {}]   ;;  %s1440_s2 = inlined_call_operand.hbm [shape: f32[8,2,32], index: 2, kind: output, shape index: {}]  }
   0x1   :  { %8 = vsyncpa [#allocation8], 0 }
   0x2   :  { %9 = vsyncpa [#allocation6], 0  ;;  %s1262_s9 = smov [#allocation4]   ;;  %s1190_s13 = scalar_lea.hbm %s1438_s0, 256 }
   0x3   :  { %s15_s10 = sshll.u32 %s1262_s9, 4  ;;  %p1191_p0 = scmp.ne.s32.totalorder %s1438_s0, %s1190_s13  ;;  %s16_s10 = int_to_ptr.vmem [resolvable:$true] %s15_s10 }
   0x4   :  { %p1194_p1 = scmp.lt.u32.totalorder %s1190_s13, %s1438_s0 }
   0x6   :  { %p1196_p2 = pnand %p1194_p1, %p1191_p0 }
   0x8   :  { %1199 = shalt.err (!%p1196_p2)
}
   0x9   :  { %s1200_s18 = scalar_lea.vmem %s16_s10, 256  ;;  %p1205_p4 = scmp.lt.s32.totalorder %s16_s10, %s16_s10 }
   0xa   :  { %p1201_p3 = scmp.ne.s32.totalorder %s16_s10, %s1200_s18  ;;  %p1206_p5 = scmp.lt.s32.totalorder %s1200_s18, %s1200_s18 }
   0xc   :  { %p1207_p6 = por %p1206_p5, %p1205_p4 }
   0xe   :  { %p1208_p7 = pnand %p1207_p6, %p1201_p3 }
  0x10   :  { %1211 = shalt.err (!%p1208_p7)
}
  0x11   :  { %s1263_s19 = smov 32   ;;  %s1264_s20 = smov 2  }
  0x12   :  { %21 = dma.hbm_to_vmem [thread:$0]  %s1438_s0, 256, %s16_s10, [#allocation5], %s1263_s19, %s1263_s19, %s1264_s20  }
  0x13   :  { %s1265_s23 = smov [#allocation7]   ;;  %s1212_s27 = scalar_lea.hbm %s1439_s1, 512 }
  0x14   :  { %s27_s24 = sshll.u32 %s1265_s23, 4  ;;  %p1213_p8 = scmp.ne.s32.totalorder %s1439_s1, %s1212_s27  ;;  %s28_s24 = int_to_ptr.vmem [resolvable:$true] %s27_s24 }
  0x15   :  { %p1216_p9 = scmp.lt.u32.totalorder %s1212_s27, %s1439_s1 }
  0x17   :  { %p1218_p10 = pnand %p1216_p9, %p1213_p8 }
  0x19   :  { %1221 = shalt.err (!%p1218_p10)
}
  0x1a   :  { %s1222_s4 = scalar_lea.vmem %s28_s24, 512  ;;  %p1227_p12 = scmp.lt.s32.totalorder %s28_s24, %s28_s24 }
  0x1b   :  { %p1223_p11 = scmp.ne.s32.totalorder %s28_s24, %s1222_s4  ;;  %p1228_p13 = scmp.lt.s32.totalorder %s1222_s4, %s1222_s4 }
  0x1d   :  { %p1229_p0 = por %p1228_p13, %p1227_p12 }
  0x1f   :  { %p1230_p1 = pnand %p1229_p0, %p1223_p11 }
  0x21   :  { %1233 = shalt.err (!%p1230_p1)
}
  0x22   :  { %s1266_s0 = smov 128   ;;  %s1267_s5 = smov 8  }
  0x23   :  { %33 = dma.hbm_to_vmem [thread:$0]  %s1439_s1, 512, %s28_s24, [#allocation8], %s1266_s0, %s1266_s0, %s1267_s5  }
  0x24   :  { %1256 = dma.done.wait [#allocation5], 256  }
  0x25   :  { %1257 = vsyncadd [#allocation5], 4294967040 }
  0x26   :  { %1258 = dma.done.wait [#allocation8], 512  }
  0x27   :  { %1259 = vsyncadd [#allocation8], 4294966784  ;;  %vm44_vm0 = vcmask 254976   ;;  %v1268_v0 = vmov 0.0|0.0   ;;  %vm1269_vm1 = vmmov 0   ;;  %v1270_v1 = vmov 0.0  }
  0x28   :  { %1066 = vmatprep.subr.bf16.mxu0 %v1268_v0  ;;  %986 = vmatprep.mubr.msk.f32.mxu0 %vm1269_vm1, %v1270_v1  ;;  %45 = vst.msk [vmem:[#allocation2] sm:$0x3] %vm44_vm0, %v1270_v1  ;;  %46 = vst.msk [vmem:[#allocation3] sm:$0x3] %vm44_vm0, %v1270_v1  ;;  %v47_v2 = vld [vmem:[#allocation7] sm:$0xff]  ;;  %v48_v3 = vld [vmem:[#allocation7 + $0x8] sm:$0xff] }
  0x29   :  { %1072 = vmatprep.subr.bf16.mxu1 %v1268_v0  ;;  %997 = vmatprep.mubr.msk.f32.mxu1 %vm1269_vm1, %v1270_v1  ;;  %v49_v4 = vld [vmem:[#allocation7 + $0x10] sm:$0xff]  ;;  %v1326_v5 = vpack.c.bf16 %v48_v3, %v47_v2  ;;  %v50_v6 = vld [vmem:[#allocation7 + $0x18] sm:$0xff]  ;;  %vm54_vm2 = vcmask 261120   ;;  %s1271_s1 = smov 64   ;;  %s1272_s8 = smov 96  }
  0x2a   :  { %v1329_v7 = vpack.c.bf16 %v50_v6, %v49_v4  ;;  %v53_v9 = vld [vmem:[#allocation4] sm:$0x3]  ;;  %v164_v29 = vld [vmem:[#allocation4 + $0x2] sm:$0x3]  ;;  %v269_v47 = vld [vmem:[#allocation4 + $0x4] sm:$0x3] }
  0x2b   :  { %1068 = vmatpush3.bf16.msra.mxu0 %v1326_v5  ;;  %1074 = vmatpush3.bf16.msra.mxu1 %v1326_v5  ;;  %v374_v3 = vld [vmem:[#allocation4 + $0x6] sm:$0x3]  ;;  %s1273_s9 = smov [#allocation9]  }
  0x2c   :  { %1069 = vmatprep.subr.bf16.mxu0 %v1268_v0  ;;  %1075 = vmatprep.subr.bf16.mxu1 %v1268_v0  ;;  %s909_s10 = sshll.u32 %s1273_s9, 4  ;;  %s910_s10 = int_to_ptr.vmem [resolvable:$true] %s909_s10 }
  0x2d   :  { %s1234_s11 = scalar_lea.vmem %s910_s10, 256  ;;  %p1239_p3 = scmp.lt.s32.totalorder %s910_s10, %s910_s10 }
  0x2e   :  { %p1235_p2 = scmp.ne.s32.totalorder %s910_s10, %s1234_s11  ;;  %p1240_p4 = scmp.lt.s32.totalorder %s1234_s11, %s1234_s11 }
  0x2f   :  { %1071 = vmatpush3.bf16.msra.mxu0 %v1329_v7  ;;  %v51_v8 = vld [vmem:[#allocation2] sm:$0x3]  ;;  %1077 = vmatpush3.bf16.msra.mxu1 %v1329_v7  ;;  %v52_v14 = vld [vmem:[#allocation3] sm:$0x3] }
  0x30   :  { %1078 = vmatprep.subr.bf16.mxu0 %v1268_v0  ;;  %1084 = vmatprep.subr.bf16.mxu1 %v1268_v0  ;;  %p1241_p5 = por %p1240_p4, %p1239_p3 }
  0x32   :  { %987 = vmatmul.mubr.msk.f32.vlgmr.msra.gmra.mrb[0].mxu0 %vm54_vm2, %v51_v8  ;;  %p1242_p6 = pnand %p1241_p5, %p1235_p2 }
  0x33   :  { %1080 = vmatpush3.bf16.msra.mxu0 %v1326_v5  ;;  %1008 = vmatprep.mubr.msk.f32.mxu0 %vm1269_vm1, %v1270_v1 }
  0x34   :  { %1081 = vmatprep.subr.bf16.mxu0 %v1268_v0 }
  0x37   :  { %1083 = vmatpush3.bf16.msra.mxu0 %v1329_v7 }
  0x38   :  { %1090 = vmatprep.subr.bf16.mxu0 %v1268_v0 }
 0x105   :  { %v124_v10 = vpop.f32.mrb[0].mxu0 }
 0x106   :  { %v128_v11 = vadd.f32 %v124_v10, %v53_v9  ;;  %v988_v12 = vpop.f32.mrb[1].mxu0 }
 0x108   :  { %1126 = vtanh.f32 %v128_v11  ;;  %v923_v15 = vmul.f32 -1.442695, %v128_v11 }
 0x10a   :  { %1128 = vpow2.f32 %v923_v15 }
 0x112   :  { %v1127_v13 = vpop.eup %1126 }
 0x113   :  { %142 = vrot.lane.b32.xlu0 %v1127_v13, %s1271_s1 }
 0x114   :  { %v1129_v16 = vpop.eup %1128 }
 0x115   :  { %v132_v17 = vadd.f32 1.0, %v1129_v16 }
 0x117   :  { %137 = vrot.lane.b32.xlu0 %v52_v14, %s1263_s19  ;;  %1130 = vrcp.f32 %v132_v17 }
 0x121   :  { %v1131_v18 = vpop.eup %1130 }
 0x185   :  { %v143_v19 = vpop.permute.xlu0 %142 }
 0x186   :  { %v145_v20 = vmul.f32 %v1131_v18, %v143_v19 }
 0x188   :  { %147 = vrot.lane.b32.xlu1 %v145_v20, %s1263_s19 }
 0x189   :  { %v138_v21 = vpop.permute.xlu0 %137 }
 0x18a   :  { %v140_v22 = vmul.f32 %v1131_v18, %v138_v21 }
 0x1fa   :  { %v148_v23 = vpop.permute.xlu1 %147 }
 0x1fb   :  { %v150_v24 = vadd.f32 %v148_v23, %v140_v22  ;;  %v479_v23 = vld [vmem:[#allocation4 + $0x8] sm:$0x3] }
 0x1fd   :  { %1132 = vtanh.f32 %v150_v24 }
 0x207   :  { %v1133_v25 = vpop.eup %1132 }
 0x208   :  { %153 = vrot.lane.b32.xlu1 %v1133_v25, %s1271_s1 }
 0x27a   :  { %v154_v26 = vpop.permute.xlu1 %153 }
 0x27b   :  { %v156_v27 = vmul.f32 %v1131_v18, %v154_v26 }
 0x27d   :  { %158 = vrot.lane.b32.xlu0 %v156_v27, %s1263_s19 }
 0x2ef   :  { %v159_v28 = vpop.permute.xlu0 %158 }
 0x2f0   :  { %162 = vst.msk [vmem:[#allocation9] sm:$0x3] %vm44_vm0, %v159_v28  ;;  %998 = vmatmul.mubr.msk.f32.vlgmr.msra.gmra.mrb[0].mxu1 %vm54_vm2, %v159_v28 }
 0x2f1   :  { %1086 = vmatpush3.bf16.msra.mxu1 %v1326_v5  ;;  %1019 = vmatprep.mubr.msk.f32.mxu1 %vm1269_vm1, %v1270_v1 }
 0x2f2   :  { %1087 = vmatprep.subr.bf16.mxu1 %v1268_v0 }
 0x2f5   :  { %1089 = vmatpush3.bf16.msra.mxu1 %v1329_v7 }
 0x2f6   :  { %1096 = vmatprep.subr.bf16.mxu1 %v1268_v0 }
 0x3c3   :  { %v233_v30 = vpop.f32.mrb[0].mxu1 }
 0x3c4   :  { %v237_v31 = vadd.f32 %v233_v30, %v164_v29  ;;  %v999_v32 = vpop.f32.mrb[1].mxu1 }
 0x3c6   :  { %1134 = vtanh.f32 %v237_v31  ;;  %v925_v34 = vmul.f32 -1.442695, %v237_v31 }
 0x3c8   :  { %1136 = vpow2.f32 %v925_v34 }
 0x3d0   :  { %v1135_v33 = vpop.eup %1134 }
 0x3d1   :  { %247 = vrot.lane.b32.xlu1 %v1135_v33, %s1271_s1 }
 0x3d2   :  { %v1137_v35 = vpop.eup %1136 }
 0x3d3   :  { %v241_v36 = vadd.f32 1.0, %v1137_v35 }
 0x3d5   :  { %1138 = vrcp.f32 %v241_v36 }
 0x3df   :  { %v1139_v37 = vpop.eup %1138 }
 0x3e0   :  { %v245_v40 = vmul.f32 %v1139_v37, %v150_v24 }
 0x443   :  { %v248_v38 = vpop.permute.xlu1 %247 }
 0x444   :  { %v250_v39 = vmul.f32 %v1139_v37, %v248_v38 }
 0x446   :  { %252 = vrot.lane.b32.xlu0 %v250_v39, %s1263_s19 }
 0x4b8   :  { %v253_v41 = vpop.permute.xlu0 %252 }
 0x4b9   :  { %v255_v42 = vadd.f32 %v253_v41, %v245_v40  ;;  %v584_v41 = vld [vmem:[#allocation4 + $0xa] sm:$0x3] }
 0x4bb   :  { %1140 = vtanh.f32 %v255_v42 }
 0x4c5   :  { %v1141_v43 = vpop.eup %1140 }
 0x4c6   :  { %258 = vrot.lane.b32.xlu1 %v1141_v43, %s1271_s1 }
 0x538   :  { %v259_v44 = vpop.permute.xlu1 %258 }
 0x539   :  { %v261_v45 = vmul.f32 %v1139_v37, %v259_v44 }
 0x53b   :  { %263 = vrot.lane.b32.xlu0 %v261_v45, %s1263_s19 }
 0x5ad   :  { %v264_v46 = vpop.permute.xlu0 %263 }
 0x5ae   :  { %267 = vst.msk [vmem:[#allocation9 + $0x2] sm:$0x3] %vm44_vm0, %v264_v46  ;;  %1009 = vmatmul.mubr.msk.f32.vlgmr.msra.gmra.mrb[2].mxu0 %vm54_vm2, %v264_v46 }
 0x5af   :  { %1092 = vmatpush3.bf16.msra.mxu0 %v1326_v5  ;;  %1030 = vmatprep.mubr.msk.f32.mxu0 %vm1269_vm1, %v1270_v1 }
 0x5b0   :  { %1093 = vmatprep.subr.bf16.mxu0 %v1268_v0 }
 0x5b3   :  { %1095 = vmatpush3.bf16.msra.mxu0 %v1329_v7 }
 0x5b4   :  { %1102 = vmatprep.subr.bf16.mxu0 %v1268_v0 }
 0x681   :  { %v338_v48 = vpop.f32.mrb[2].mxu0 }
 0x682   :  { %v342_v49 = vadd.f32 %v338_v48, %v269_v47  ;;  %v1010_v50 = vpop.f32.mrb[3].mxu0 }
 0x684   :  { %1142 = vtanh.f32 %v342_v49  ;;  %v927_v52 = vmul.f32 -1.442695, %v342_v49 }
 0x686   :  { %1144 = vpow2.f32 %v927_v52 }
 0x68e   :  { %v1143_v51 = vpop.eup %1142 }
 0x68f   :  { %352 = vrot.lane.b32.xlu1 %v1143_v51, %s1271_s1 }
 0x690   :  { %v1145_v53 = vpop.eup %1144 }
 0x691   :  { %v346_v54 = vadd.f32 1.0, %v1145_v53 }
 0x693   :  { %1146 = vrcp.f32 %v346_v54 }
 0x69d   :  { %v1147_v55 = vpop.eup %1146 }
 0x69e   :  { %v350_v58 = vmul.f32 %v1147_v55, %v255_v42 }
 0x701   :  { %v353_v56 = vpop.permute.xlu1 %352 }
 0x702   :  { %v355_v57 = vmul.f32 %v1147_v55, %v353_v56 }
 0x704   :  { %357 = vrot.lane.b32.xlu0 %v355_v57, %s1263_s19 }
 0x776   :  { %v358_v59 = vpop.permute.xlu0 %357 }
 0x777   :  { %v360_v60 = vadd.f32 %v358_v59, %v350_v58 }
 0x779   :  { %1148 = vtanh.f32 %v360_v60 }
 0x783   :  { %v1149_v61 = vpop.eup %1148 }
 0x784   :  { %363 = vrot.lane.b32.xlu1 %v1149_v61, %s1271_s1 }
 0x7f6   :  { %v364_v62 = vpop.permute.xlu1 %363 }
 0x7f7   :  { %v366_v63 = vmul.f32 %v1147_v55, %v364_v62  ;;  %v689_v55 = vld [vmem:[#allocation4 + $0xc] sm:$0x3] }
 0x7f9   :  { %368 = vrot.lane.b32.xlu0 %v366_v63, %s1263_s19 }
 0x86b   :  { %v369_v2 = vpop.permute.xlu0 %368 }
 0x86c   :  { %372 = vst.msk [vmem:[#allocation9 + $0x4] sm:$0x3] %vm44_vm0, %v369_v2  ;;  %1020 = vmatmul.mubr.msk.f32.vlgmr.msra.gmra.mrb[2].mxu1 %vm54_vm2, %v369_v2 }
 0x86d   :  { %1098 = vmatpush3.bf16.msra.mxu1 %v1326_v5  ;;  %1041 = vmatprep.mubr.msk.f32.mxu1 %vm1269_vm1, %v1270_v1 }
 0x86e   :  { %1099 = vmatprep.subr.bf16.mxu1 %v1268_v0 }
 0x871   :  { %1101 = vmatpush3.bf16.msra.mxu1 %v1329_v7 }
 0x872   :  { %1108 = vmatprep.subr.bf16.mxu1 %v1268_v0 }
 0x93f   :  { %v443_v4 = vpop.f32.mrb[2].mxu1 }
 0x940   :  { %v447_v6 = vadd.f32 %v443_v4, %v374_v3  ;;  %v1021_v8 = vpop.f32.mrb[3].mxu1 }
 0x942   :  { %1150 = vtanh.f32 %v447_v6  ;;  %v929_v10 = vmul.f32 -1.442695, %v447_v6 }
 0x944   :  { %1152 = vpow2.f32 %v929_v10 }
 0x94c   :  { %v1151_v9 = vpop.eup %1150 }
 0x94d   :  { %457 = vrot.lane.b32.xlu1 %v1151_v9, %s1271_s1 }
 0x94e   :  { %v1153_v11 = vpop.eup %1152 }
 0x94f   :  { %v451_v12 = vadd.f32 1.0, %v1153_v11 }
 0x951   :  { %1154 = vrcp.f32 %v451_v12 }
 0x95b   :  { %v1155_v13 = vpop.eup %1154 }
 0x95c   :  { %v455_v16 = vmul.f32 %v1155_v13, %v360_v60 }
 0x9bf   :  { %v458_v14 = vpop.permute.xlu1 %457 }
 0x9c0   :  { %v460_v15 = vmul.f32 %v1155_v13, %v458_v14 }
 0x9c2   :  { %462 = vrot.lane.b32.xlu0 %v460_v15, %s1263_s19 }
 0xa34   :  { %v463_v17 = vpop.permute.xlu0 %462 }
 0xa35   :  { %v465_v18 = vadd.f32 %v463_v17, %v455_v16 }
 0xa37   :  { %1156 = vtanh.f32 %v465_v18 }
 0xa41   :  { %v1157_v19 = vpop.eup %1156 }
 0xa42   :  { %468 = vrot.lane.b32.xlu1 %v1157_v19, %s1271_s1 }
 0xab4   :  { %v469_v20 = vpop.permute.xlu1 %468 }
 0xab5   :  { %v471_v21 = vmul.f32 %v1155_v13, %v469_v20  ;;  %v794_v13 = vld [vmem:[#allocation4 + $0xe] sm:$0x3] }
 0xab7   :  { %473 = vrot.lane.b32.xlu0 %v471_v21, %s1263_s19 }
 0xb29   :  { %v474_v22 = vpop.permute.xlu0 %473 }
 0xb2a   :  { %477 = vst.msk [vmem:[#allocation9 + $0x6] sm:$0x3] %vm44_vm0, %v474_v22  ;;  %1031 = vmatmul.mubr.msk.f32.vlgmr.msra.gmra.mrb[4].mxu0 %vm54_vm2, %v474_v22 }
 0xb2b   :  { %1104 = vmatpush3.bf16.msra.mxu0 %v1326_v5  ;;  %1052 = vmatprep.mubr.msk.f32.mxu0 %vm1269_vm1, %v1270_v1 }
 0xb2c   :  { %1105 = vmatprep.subr.bf16.mxu0 %v1268_v0 }
 0xb2f   :  { %1107 = vmatpush3.bf16.msra.mxu0 %v1329_v7 }
 0xbfd   :  { %v548_v24 = vpop.f32.mrb[4].mxu0 }
 0xbfe   :  { %v552_v25 = vadd.f32 %v548_v24, %v479_v23  ;;  %v1032_v26 = vpop.f32.mrb[5].mxu0 }
 0xc00   :  { %1158 = vtanh.f32 %v552_v25  ;;  %v931_v28 = vmul.f32 -1.442695, %v552_v25 }
 0xc02   :  { %1160 = vpow2.f32 %v931_v28 }
 0xc0a   :  { %v1159_v27 = vpop.eup %1158 }
 0xc0b   :  { %562 = vrot.lane.b32.xlu1 %v1159_v27, %s1271_s1 }
 0xc0c   :  { %v1161_v29 = vpop.eup %1160 }
 0xc0d   :  { %v556_v30 = vadd.f32 1.0, %v1161_v29 }
 0xc0f   :  { %1162 = vrcp.f32 %v556_v30 }
 0xc19   :  { %v1163_v31 = vpop.eup %1162 }
 0xc1a   :  { %v560_v34 = vmul.f32 %v1163_v31, %v465_v18 }
 0xc7d   :  { %v563_v32 = vpop.permute.xlu1 %562 }
 0xc7e   :  { %v565_v33 = vmul.f32 %v1163_v31, %v563_v32 }
 0xc80   :  { %567 = vrot.lane.b32.xlu0 %v565_v33, %s1263_s19 }
 0xcf2   :  { %v568_v35 = vpop.permute.xlu0 %567 }
 0xcf3   :  { %v570_v36 = vadd.f32 %v568_v35, %v560_v34 }
 0xcf5   :  { %1164 = vtanh.f32 %v570_v36 }
 0xcff   :  { %v1165_v37 = vpop.eup %1164 }
 0xd00   :  { %573 = vrot.lane.b32.xlu1 %v1165_v37, %s1271_s1 }
 0xd72   :  { %v574_v38 = vpop.permute.xlu1 %573 }
 0xd73   :  { %v576_v39 = vmul.f32 %v1163_v31, %v574_v38 }
 0xd75   :  { %578 = vrot.lane.b32.xlu0 %v576_v39, %s1263_s19 }
 0xde7   :  { %v579_v40 = vpop.permute.xlu0 %578 }
 0xde8   :  { %582 = vst.msk [vmem:[#allocation9 + $0x8] sm:$0x3] %vm44_vm0, %v579_v40  ;;  %1042 = vmatmul.mubr.msk.f32.vlgmr.msra.gmra.mrb[4].mxu1 %vm54_vm2, %v579_v40 }
 0xde9   :  { %1110 = vmatpush3.bf16.msra.mxu1 %v1326_v5  ;;  %1063 = vmatprep.mubr.msk.f32.mxu1 %vm1269_vm1, %v1270_v1 }
 0xdea   :  { %1111 = vmatprep.subr.bf16.mxu1 %v1268_v0 }
 0xded   :  { %1113 = vmatpush3.bf16.msra.mxu1 %v1329_v7 }
 0xebb   :  { %v653_v42 = vpop.f32.mrb[4].mxu1 }
 0xebc   :  { %v657_v43 = vadd.f32 %v653_v42, %v584_v41  ;;  %v1043_v44 = vpop.f32.mrb[5].mxu1 }
 0xebe   :  { %1166 = vtanh.f32 %v657_v43  ;;  %v933_v46 = vmul.f32 -1.442695, %v657_v43 }
 0xec0   :  { %1168 = vpow2.f32 %v933_v46 }
 0xec8   :  { %v1167_v45 = vpop.eup %1166 }
 0xec9   :  { %667 = vrot.lane.b32.xlu1 %v1167_v45, %s1271_s1 }
 0xeca   :  { %v1169_v47 = vpop.eup %1168 }
 0xecb   :  { %v661_v48 = vadd.f32 1.0, %v1169_v47 }
 0xecd   :  { %1170 = vrcp.f32 %v661_v48 }
 0xed7   :  { %v1171_v5 = vpop.eup %1170 }
 0xed8   :  { %v665_v0 = vmul.f32 %v1171_v5, %v570_v36 }
 0xf3b   :  { %v668_v49 = vpop.permute.xlu1 %667 }
 0xf3c   :  { %v670_v1 = vmul.f32 %v1171_v5, %v668_v49 }
 0xf3e   :  { %672 = vrot.lane.b32.xlu0 %v670_v1, %s1263_s19 }
 0xfb0   :  { %v673_v7 = vpop.permute.xlu0 %672 }
 0xfb1   :  { %v675_v50 = vadd.f32 %v673_v7, %v665_v0 }
 0xfb3   :  { %1172 = vtanh.f32 %v675_v50 }
 0xfbd   :  { %v1173_v51 = vpop.eup %1172 }
 0xfbe   :  { %678 = vrot.lane.b32.xlu1 %v1173_v51, %s1271_s1 }
0x1030   :  { %v679_v52 = vpop.permute.xlu1 %678 }
0x1031   :  { %v681_v53 = vmul.f32 %v1171_v5, %v679_v52 }
0x1033   :  { %683 = vrot.lane.b32.xlu0 %v681_v53, %s1263_s19 }
0x10a5   :  { %v684_v54 = vpop.permute.xlu0 %683 }
0x10a6   :  { %687 = vst.msk [vmem:[#allocation9 + $0xa] sm:$0x3] %vm44_vm0, %v684_v54  ;;  %1053 = vmatmul.mubr.msk.f32.vlgmr.msra.gmra.mrb[6].mxu0 %vm54_vm2, %v684_v54 }
0x1179   :  { %v758_v56 = vpop.f32.mrb[6].mxu0 }
0x117a   :  { %v762_v57 = vadd.f32 %v758_v56, %v689_v55  ;;  %v1054_v58 = vpop.f32.mrb[7].mxu0 }
0x117c   :  { %1174 = vtanh.f32 %v762_v57  ;;  %v935_v60 = vmul.f32 -1.442695, %v762_v57 }
0x117e   :  { %1176 = vpow2.f32 %v935_v60 }
0x1186   :  { %v1175_v59 = vpop.eup %1174 }
0x1187   :  { %772 = vrot.lane.b32.xlu1 %v1175_v59, %s1271_s1 }
0x1188   :  { %v1177_v61 = vpop.eup %1176 }
0x1189   :  { %v766_v62 = vadd.f32 1.0, %v1177_v61 }
0x118b   :  { %1178 = vrcp.f32 %v766_v62 }
0x1195   :  { %v1179_v63 = vpop.eup %1178 }
0x1196   :  { %v770_v4 = vmul.f32 %v1179_v63, %v675_v50 }
0x11f9   :  { %v773_v2 = vpop.permute.xlu1 %772 }
0x11fa   :  { %v775_v3 = vmul.f32 %v1179_v63, %v773_v2 }
0x11fc   :  { %777 = vrot.lane.b32.xlu0 %v775_v3, %s1263_s19 }
0x126e   :  { %v778_v6 = vpop.permute.xlu0 %777 }
0x126f   :  { %v780_v8 = vadd.f32 %v778_v6, %v770_v4 }
0x1271   :  { %1180 = vtanh.f32 %v780_v8 }
0x127b   :  { %v1181_v9 = vpop.eup %1180 }
0x127c   :  { %783 = vrot.lane.b32.xlu1 %v1181_v9, %s1271_s1 }
0x12ee   :  { %v784_v10 = vpop.permute.xlu1 %783 }
0x12ef   :  { %v786_v11 = vmul.f32 %v1179_v63, %v784_v10 }
0x12f1   :  { %788 = vrot.lane.b32.xlu0 %v786_v11, %s1263_s19 }
0x1363   :  { %v789_v12 = vpop.permute.xlu0 %788 }
0x1364   :  { %792 = vst.msk [vmem:[#allocation9 + $0xc] sm:$0x3] %vm44_vm0, %v789_v12  ;;  %1064 = vmatmul.mubr.msk.f32.vlgmr.msra.gmra.mrb[6].mxu1 %vm54_vm2, %v789_v12 }
0x1437   :  { %v863_v14 = vpop.f32.mrb[6].mxu1 }
0x1438   :  { %v867_v15 = vadd.f32 %v863_v14, %v794_v13  ;;  %v1065_v16 = vpop.f32.mrb[7].mxu1 }
0x143a   :  { %1182 = vtanh.f32 %v867_v15  ;;  %v937_v18 = vmul.f32 -1.442695, %v867_v15 }
0x143c   :  { %1184 = vpow2.f32 %v937_v18 }
0x1444   :  { %v1183_v17 = vpop.eup %1182 }
0x1445   :  { %877 = vrot.lane.b32.xlu1 %v1183_v17, %s1271_s1 }
0x1446   :  { %v1185_v19 = vpop.eup %1184 }
0x1447   :  { %v871_v20 = vadd.f32 1.0, %v1185_v19 }
0x1449   :  { %1186 = vrcp.f32 %v871_v20 }
0x1453   :  { %v1187_v21 = vpop.eup %1186 }
0x1454   :  { %v875_v24 = vmul.f32 %v1187_v21, %v780_v8 }
0x14b7   :  { %v878_v22 = vpop.permute.xlu1 %877 }
0x14b8   :  { %v880_v23 = vmul.f32 %v1187_v21, %v878_v22 }
0x14ba   :  { %882 = vrot.lane.b32.xlu0 %v880_v23, %s1263_s19 }
0x152c   :  { %v883_v25 = vpop.permute.xlu0 %882 }
0x152d   :  { %v885_v26 = vadd.f32 %v883_v25, %v875_v24 }
0x152f   :  { %1188 = vtanh.f32 %v885_v26 }
0x1539   :  { %v1189_v27 = vpop.eup %1188 }
0x153a   :  { %888 = vrot.lane.b32.xlu1 %v1189_v27, %s1271_s1 }
0x153e   :  { %900 = vrot.lane.b32.xlu1 %v885_v26, %s1272_s8 }
0x15ac   :  { %v889_v28 = vpop.permute.xlu1 %888 }
0x15ad   :  { %v891_v29 = vmul.f32 %v1187_v21, %v889_v28 }
0x15af   :  { %893 = vrot.lane.b32.xlu0 %v891_v29, %s1263_s19 }
0x15b0   :  { %v901_v30 = vpop.permute.xlu1 %900 }
0x15b1   :  { %903 = vst.msk [vmem:[#allocation3] sm:$0x3] %vm44_vm0, %v901_v30 }
0x1621   :  { %v894_v31 = vpop.permute.xlu0 %893 }
0x1622   :  { %897 = vst.msk [vmem:[#allocation9 + $0xe] sm:$0x3] %vm44_vm0, %v894_v31  ;;  %898 = vst.msk [vmem:[#allocation2] sm:$0x3] %vm44_vm0, %v894_v31 }
0x1623   :  { %1245 = shalt.err (!%p1242_p6)
}
0x1624   :  { %s1246_s14 = scalar_lea.hbm %s1440_s2, 256 }
0x1625   :  { %p1247_p7 = scmp.ne.s32.totalorder %s1440_s2, %s1246_s14  ;;  %p1250_p8 = scmp.lt.u32.totalorder %s1246_s14, %s1440_s2 }
0x1627   :  { %p1252_p9 = pnand %p1250_p8, %p1247_p7 }
0x1629   :  { %1255 = shalt.err (!%p1252_p9)
}
0x162a   :  { %915 = dma.vmem_to_hbm [thread:$0]  %s910_s10, 256, %s1440_s2, [#allocation6], %s1263_s19, %s1263_s19, %s1264_s20  }
0x162b   :  { %1260 = dma.done.wait [#allocation6], 256  }
0x162c   :  { %1261 = vsyncadd [#allocation6], 4294967040 }
0x162d   :  { %919 = vsyncpa [#allocation5], 1 }
0x162e   :  { %920 = vsyncpa [#allocation8], 1 }
0x162f   :  { %921 = vsyncpa [#allocation6], 1 }

</bundles_post_ra>
